<compile_context>
chip_gen: v5e
topology: v5e:2x2
jax: 0.10.0
libtpu: 0.0.40
codegen_flags: <defaults>
</compile_context>

<pallas_src>
import functools
import numpy as np
import jax
import jax.numpy as jnp
from jax.experimental import pallas as pl
from jax.experimental.pallas import tpu as pltpu


def _round_up(x, m):
    return ((x + m - 1) // m) * m


def _pick_window_batch(nW, N, batch, cap=8, min_steps=8):
    """Largest WB <= cap dividing nW with (WB*N)%8==0, keeping >= min_steps
    grid steps (so the pipeline / both v7x TensorCores stay busy)."""
    cands = {nW}                                    # full extent always legal
    for d in range(1, min(nW, cap) + 1):
        if nW % d == 0 and (d * N) % 8 == 0:
            cands.add(d)
    ok = [d for d in cands if batch * (nW // d) >= min_steps]
    if ok:
        return max(ok)
    return min(cands)                               # maximize step count


def _vmem_limit_bytes(block_bytes, scratch_bytes=0):
    """Double-buffered block footprint + temporaries, with headroom."""
    need = 2 * block_bytes + scratch_bytes
    need = int(need * 1.5) + (2 << 20)
    return min(max(need, 16 << 20), 48 << 20)


# --------------------------------------------------------------------------
# Kernel 1: fused norm1 + window attention (+ fused QKV / output projection)
#   grid = (B, nW // WB); one step handles WB windows of one batch element.
# --------------------------------------------------------------------------
def _window_attn_kernel(*refs, num_heads, head_dim, tokens, scale, eps, has_mask):
    if has_mask:
        (x_ref, msk_ref, bias_ref, lnw_ref, lnb_ref,
         wqkv_ref, bqkv_ref, wp_ref, bp_ref, o_ref) = refs
    else:
        (x_ref, bias_ref, lnw_ref, lnb_ref,
         wqkv_ref, bqkv_ref, wp_ref, bp_ref, o_ref) = refs
        msk_ref = None

    T, C = x_ref.shape[1], x_ref.shape[2]
    WB = T // tokens

    # fused LayerNorm (norm1), stats in f32
    x = x_ref[0].astype(jnp.float32)                # (T, C) token-major slab
    mean = jnp.mean(x, axis=-1, keepdims=True)
    var = jnp.mean((x - mean) ** 2, axis=-1, keepdims=True)
    xn = (x - mean) * jax.lax.rsqrt(var + eps) * lnw_ref[...] + lnb_ref[...]
    if has_mask:
        # reference pads with zeros AFTER norm1 -> zero out padded tokens
        xn = xn * msk_ref[...]
    xf = xn.astype(jnp.bfloat16)

    # one lane-dense (T,C)@(C,3C) QKV projection on the MXU
    qkv = (jnp.dot(xf, wqkv_ref[...], preferred_element_type=jnp.float32)
           + bqkv_ref[...])                         # (T, 3C)
    qkv = qkv.reshape(WB, tokens, 3 * C)

    bias = bias_ref[...].astype(jnp.float32)        # (nH, WB or 1, N, N)

    head_out = []
    for h in range(num_heads):                      # static unroll (nH <= 8)
        c0 = h * head_dim
        q = qkv[:, :, c0:c0 + head_dim] * scale
        k = qkv[:, :, C + c0:C + c0 + head_dim]
        v = qkv[:, :, 2 * C + c0:2 * C + c0 + head_dim]

        s = jnp.einsum('wnd,wmd->wnm', q.astype(jnp.bfloat16),
                       k.astype(jnp.bfloat16),
                       preferred_element_type=jnp.float32)     # (WB, N, N)
        s = s + bias[h]                             # rel bias (+ shift mask)
        s = s - jnp.max(s, axis=-1, keepdims=True)
        p = jnp.exp(s)
        p = p * pl.reciprocal(jnp.sum(p, axis=-1, keepdims=True), approx=True)

        head_out.append(jnp.einsum('wnm,wmd->wnd', p.astype(jnp.bfloat16),
                                   v.astype(jnp.bfloat16),
                                   preferred_element_type=jnp.float32))

    # fuse the output projection across heads: lane-concat then one (T,C)@(C,C)
    o_all = jnp.concatenate(head_out, axis=-1).reshape(T, C).astype(jnp.bfloat16)
    out = jnp.dot(o_all, wp_ref[...], preferred_element_type=jnp.float32) + bp_ref[...]
    o_ref[0] = out.astype(o_ref.dtype)


def window_attention_pallas(xw_flat, token_mask, bias, ln1_w, ln1_b,
                            wqkv, bqkv, wproj, bproj, num_heads,
                            window_tokens, *, eps=1e-5):
    B, LW, C = xw_flat.shape
    N = window_tokens
    nW = LW // N
    hd = C // num_heads
    assert num_heads * hd == C
    scale = float(hd) ** -0.5
    WB = _pick_window_batch(nW, N, B)
    T = WB * N
    has_mask = token_mask is not None

    wqkv_b = wqkv.astype(jnp.bfloat16)              # (C, 3C)
    wp_b = wproj.astype(jnp.bfloat16)               # (C, C)
    bias_b = bias.astype(jnp.bfloat16)              # (nH, nW or 1, N, N)

    if bias.shape[1] == 1:                          # shift == 0: single bias
        WBb = 1
        bias_spec = pl.BlockSpec((num_heads, 1, N, N), lambda b, g: (0, 0, 0, 0))
    else:                                           # shifted: per-window bias
        WBb = WB
        bias_spec = pl.BlockSpec((num_heads, WB, N, N), lambda b, g: (0, g, 0, 0))

    inputs = [xw_flat]
    in_specs = [pl.BlockSpec((1, T, C), lambda b, g: (b, g, 0))]
    if has_mask:
        inputs.append(token_mask)
        in_specs.append(pl.BlockSpec((T, 1), lambda b, g: (g, 0)))
    inputs += [bias_b, ln1_w.reshape(1, C), ln1_b.reshape(1, C),
               wqkv_b, bqkv.reshape(1, 3 * C), wp_b, bproj.reshape(1, C)]
    in_specs += [bias_spec,
                 pl.BlockSpec((1, C), lambda b, g: (0, 0)),
                 pl.BlockSpec((1, C), lambda b, g: (0, 0)),
                 pl.BlockSpec((C, 3 * C), lambda b, g: (0, 0)),
                 pl.BlockSpec((1, 3 * C), lambda b, g: (0, 0)),
                 pl.BlockSpec((C, C), lambda b, g: (0, 0)),
                 pl.BlockSpec((1, C), lambda b, g: (0, 0))]

    block_bytes = (2 * T * C * 4                    # x in block + out block
                   + (T * 4 if has_mask else 0)
                   + num_heads * WBb * N * N * 2    # bf16 bias
                   + 2 * C * 4                      # LN weight / bias
                   + 3 * C * C * 2 + 3 * C * 4      # bf16 Wqkv + bias
                   + C * C * 2 + C * 4)             # bf16 Wproj + bias
    scratch_bytes = 8 * T * C * 4 + 8 * WB * N * N * 4

    kern = functools.partial(_window_attn_kernel, num_heads=num_heads,
                             head_dim=hd, tokens=N, scale=scale, eps=eps,
                             has_mask=has_mask)
    return pl.pallas_call(
        kern,
        out_shape=jax.ShapeDtypeStruct((B, LW, C), xw_flat.dtype),
        grid=(B, nW // WB),
        in_specs=in_specs,
        out_specs=pl.BlockSpec((1, T, C), lambda b, g: (b, g, 0)),
        compiler_params=pltpu.CompilerParams(
            dimension_semantics=("parallel", "parallel"),
            vmem_limit_bytes=_vmem_limit_bytes(block_bytes, scratch_bytes)),
    )(*inputs)


# --------------------------------------------------------------------------
# Kernel 2: fused residual + norm2 + MLP (fc1, GELU, fc2) + residual
# --------------------------------------------------------------------------
def _mlp_block_kernel(sc_ref, a_ref, lnw_ref, lnb_ref, w1_ref, b1_ref,
                      w2_ref, b2_ref, o_ref, *, eps):
    x1 = sc_ref[...].astype(jnp.float32) + a_ref[...].astype(jnp.float32)
    mean = jnp.mean(x1, axis=-1, keepdims=True)
    var = jnp.mean((x1 - mean) ** 2, axis=-1, keepdims=True)
    y = (x1 - mean) * jax.lax.rsqrt(var + eps) * lnw_ref[...] + lnb_ref[...]
    h = jnp.dot(y.astype(jnp.bfloat16), w1_ref[...],
                preferred_element_type=jnp.float32) + b1_ref[...]
    h = jax.nn.gelu(h, approximate=False).astype(jnp.bfloat16)   # exact erf GELU
    m = jnp.dot(h, w2_ref[...], preferred_element_type=jnp.float32) + b2_ref[...]
    o_ref[...] = (x1 + m).astype(o_ref.dtype)


def mlp_block_pallas(shortcut, attn_out, lnw, lnb, w1, b1, w2, b2,
                     *, eps=1e-5, max_tile=256):
    R, C = shortcut.shape
    Hd = w1.shape[1]
    tile = min(max_tile, _round_up(R, 8))
    grid = (pl.cdiv(R, tile),)          # partial last block: row-wise ops only,
                                        # garbage rows are masked on writeback
    block_bytes = (3 * tile * C * 4                 # shortcut + attn + out
                   + 2 * C * 4                      # LN weight / bias
                   + C * Hd * 2 + Hd * 4            # bf16 w1 + b1
                   + Hd * C * 2 + C * 4)            # bf16 w2 + b2
    scratch_bytes = 2 * tile * Hd * 4               # f32 fc1 intermediate + GELU

    return pl.pallas_call(
        functools.partial(_mlp_block_kernel, eps=eps),
        out_shape=jax.ShapeDtypeStruct((R, C), shortcut.dtype),
        grid=grid,
        in_specs=[
            pl.BlockSpec((tile, C), lambda i: (i, 0)),
            pl.BlockSpec((tile, C), lambda i: (i, 0)),
            pl.BlockSpec((1, C), lambda i: (0, 0)),
            pl.BlockSpec((1, C), lambda i: (0, 0)),
            pl.BlockSpec((C, Hd), lambda i: (0, 0)),
            pl.BlockSpec((1, Hd), lambda i: (0, 0)),
            pl.BlockSpec((Hd, C), lambda i: (0, 0)),
            pl.BlockSpec((1, C), lambda i: (0, 0)),
        ],
        out_specs=pl.BlockSpec((tile, C), lambda i: (i, 0)),
        compiler_params=pltpu.CompilerParams(
            dimension_semantics=("parallel",),
            vmem_limit_bytes=_vmem_limit_bytes(block_bytes, scratch_bytes)),
    )(shortcut, attn_out, lnw.reshape(1, C), lnb.reshape(1, C),
      w1.astype(jnp.bfloat16), b1.reshape(1, Hd),
      w2.astype(jnp.bfloat16), b2.reshape(1, C))


# --------------------------------------------------------------------------
# Glue: window partition / reverse, shift, padding, relative position bias
# (pure XLA; each is a cheap layout pass on the small feature map)
# --------------------------------------------------------------------------
def window_partition(x, ws):                                    # (B*nW, ws, ws, C)
    B, H, W, C = x.shape
    x = x.reshape(B, H // ws, ws, W // ws, ws, C)
    return x.transpose(0, 1, 3, 2, 4, 5).reshape(-1, ws, ws, C)


def window_reverse(win, ws, H, W):
    B = win.shape[0] // ((H // ws) * (W // ws))
    x = win.reshape(B, H // ws, W // ws, ws, ws, -1)
    return x.transpose(0, 1, 3, 2, 4, 5).reshape(B, H, W, -1)


def window_partition_batched(x, ws):                            # (B, nW, N, C)
    B, H, W, C = x.shape
    x = x.reshape(B, H // ws, ws, W // ws, ws, C)
    x = x.transpose(0, 1, 3, 2, 4, 5)
    return x.reshape(B, (H // ws) * (W // ws), ws * ws, C)


def window_reverse_batched(win, ws, Hp, Wp):
    B, nW, N, C = win.shape
    x = win.reshape(B, Hp // ws, Wp // ws, ws, ws, C)
    return x.transpose(0, 1, 3, 2, 4, 5).reshape(B, Hp, Wp, C)


def relative_position_index(ws):
    coords = np.stack(np.meshgrid(np.arange(ws), np.arange(ws), indexing="ij"))
    coords_flat = coords.reshape(2, -1)
    rel = coords_flat[:, :, None] - coords_flat[:, None, :]
    rel = rel.transpose(1, 2, 0).astype(np.int64)
    rel[:, :, 0] += ws - 1
    rel[:, :, 1] += ws - 1
    rel[:, :, 0] *= 2 * ws - 1
    return rel.sum(-1).astype(np.int32)                         # (N, N)


def make_shift_mask(Hp, Wp, ws, shift):
    img_mask = np.zeros((1, Hp, Wp, 1), np.float32)
    h_slices = (slice(0, -ws), slice(-ws, -shift), slice(-shift, None))
    w_slices = (slice(0, -ws), slice(-ws, -shift), slice(-shift, None))
    cnt = 0
    for hs in h_slices:
        for wsl in w_slices:
            img_mask[:, hs, wsl, :] = cnt
            cnt += 1
    mw = window_partition(jnp.asarray(img_mask), ws).reshape(-1, ws * ws)
    attn_mask = mw[:, None, :] - mw[:, :, None]
    return jnp.where(attn_mask != 0, -100.0, 0.0).astype(jnp.float32)  # (nW, N, N)


def swin_block_forward(x, params, *, H, W, window_size, shift_size, num_heads):
    B, L, C = x.shape
    assert L == H * W
    ws = window_size
    N = ws * ws
    shortcut = x.reshape(B * L, C)

    # pad to multiple of window size (norm1 is fused in the kernel; padded
    # tokens are zeroed there via token_mask to match "norm then pad")
    xi = x.reshape(B, H, W, C)
    pad_r = (ws - W % ws) % ws
    pad_b = (ws - H % ws) % ws
    if pad_r or pad_b:
        xi = jnp.pad(xi, ((0, 0), (0, pad_b), (0, pad_r), (0, 0)))
    Hp, Wp = H + pad_b, W + pad_r

    if shift_size > 0:
        xi = jnp.roll(xi, (-shift_size, -shift_size), axis=(1, 2))

    xw = window_partition_batched(xi, ws)                       # (B, nW, N, C)
    nW = xw.shape[1]
    xw_flat = xw.reshape(B, nW * N, C)

    # per-token validity mask only when padding is actually present
    if pad_r or pad_b:
        valid = jnp.zeros((1, Hp, Wp, 1), jnp.float32).at[:, :H, :W, :].set(1.0)
        if shift_size > 0:
            valid = jnp.roll(valid, (-shift_size, -shift_size), axis=(1, 2))
        token_mask = window_partition_batched(valid, ws)[0].reshape(nW * N, 1)
    else:
        token_mask = None

    # relative-position bias: (nH, nW, N, N) when shifted, (nH, 1, N, N) otherwise
    rel_idx = relative_position_index(ws)
    rel_bias = params["rel_table"][rel_idx.reshape(-1)].reshape(N, N, num_heads)
    rel_bias = jnp.transpose(rel_bias, (2, 0, 1)).astype(jnp.float32)   # (nH, N, N)
    if shift_size > 0:
        smask = make_shift_mask(Hp, Wp, ws, shift_size)                 # (nW, N, N)
        bias = rel_bias[:, None, :, :] + smask[None, :, :, :]
    else:
        bias = rel_bias[:, None, :, :]

    # fused norm1 + window attention (Pallas)
    attn_flat = window_attention_pallas(
        xw_flat, token_mask, bias, params["ln1_w"], params["ln1_b"],
        params["wqkv"], params["bqkv"], params["wproj"], params["bproj"],
        num_heads, N)

    # window reverse + reverse shift + unpad
    shifted = window_reverse_batched(attn_flat.reshape(B, nW, N, C), ws, Hp, Wp)
    if shift_size > 0:
        shifted = jnp.roll(shifted, (shift_size, shift_size), axis=(1, 2))
    attn_out = shifted[:, :H, :W, :].reshape(B * L, C)

    # residual + norm2 + MLP + residual (fused Pallas kernel)
    out = mlp_block_pallas(shortcut, attn_out,
                           params["ln2_w"], params["ln2_b"],
                           params["w1"], params["b1"],
                           params["w2"], params["b2"])
    return out.reshape(B, L, C)


# --------------------------------------------------------------------------
# Pure-JAX reference (mirrors the PyTorch forward) for sanity checking
# --------------------------------------------------------------------------
def _ln_ref(x, w, b, eps=1e-5):
    m = jnp.mean(x, -1, keepdims=True)
    v = jnp.mean((x - m) ** 2, -1, keepdims=True)
    return (x - m) / jnp.sqrt(v + eps) * w + b


def swin_block_ref(x, params, *, H, W, window_size, shift_size, num_heads):
    B, L, C = x.shape
    ws = window_size
    N = ws * ws
    hd = C // num_heads
    shortcut = x
    xl = _ln_ref(x, params["ln1_w"], params["ln1_b"]).reshape(B, H, W, C)
    pad_r = (ws - W % ws) % ws
    pad_b = (ws - H % ws) % ws
    xl = jnp.pad(xl, ((0, 0), (0, pad_b), (0, pad_r), (0, 0)))
    Hp, Wp = H + pad_b, W + pad_r
    if shift_size > 0:
        xl = jnp.roll(xl, (-shift_size, -shift_size), axis=(1, 2))
    xw = window_partition(xl, ws).reshape(-1, N, C)
    qkv = xw @ params["wqkv"] + params["bqkv"]
    qkv = qkv.reshape(-1, N, 3, num_heads, hd).transpose(2, 0, 3, 1, 4)
    q, k, v = qkv[0], qkv[1], qkv[2]
    attn = (q * hd ** (-0.5)) @ jnp.swapaxes(k, -2, -1)
    rel_idx = relative_position_index(ws)
    rel_bias = params["rel_table"][rel_idx.reshape(-1)].reshape(N, N, num_heads)
    attn = attn + jnp.transpose(rel_bias, (2, 0, 1))[None]
    if shift_size > 0:
        mask = make_shift_mask(Hp, Wp, ws, shift_size)
        nW = mask.shape[0]
        attn = attn.reshape(-1, nW, num_heads, N, N) + mask[None, :, None]
        attn = attn.reshape(-1, num_heads, N, N)
    attn = jax.nn.softmax(attn, axis=-1)
    out = (attn @ v).transpose(0, 2, 1, 3).reshape(-1, N, C)
    out = out @ params["wproj"] + params["bproj"]
    out = window_reverse(out.reshape(-1, ws, ws, C), ws, Hp, Wp)
    if shift_size > 0:
        out = jnp.roll(out, (shift_size, shift_size), axis=(1, 2))
    out = out[:, :H, :W, :].reshape(B, L, C)
    x1 = shortcut + out
    y = _ln_ref(x1, params["ln2_w"], params["ln2_b"])
    h = jax.nn.gelu(y @ params["w1"] + params["b1"], approximate=False)
    return x1 + (h @ params["w2"] + params["b2"])


# --------------------------------------------------------------------------
if __name__ == "__main__":
    dim, num_heads = 32, 4
    window_size = 4
    mlp_ratio = 4.0
    hidden = int(dim * mlp_ratio)

    key = jax.random.PRNGKey(0)
    ks = jax.random.split(key, 12)
    params = {
        "ln1_w": 1.0 + 0.1 * jax.random.normal(ks[0], (dim,), jnp.float32),
        "ln1_b": 0.02 * jax.random.normal(ks[1], (dim,), jnp.float32),
        "wqkv": 0.02 * jax.random.normal(ks[2], (dim, 3 * dim), jnp.float32),
        "bqkv": 0.02 * jax.random.normal(ks[3], (3 * dim,), jnp.float32),
        "wproj": 0.02 * jax.random.normal(ks[4], (dim, dim), jnp.float32),
        "bproj": 0.02 * jax.random.normal(ks[5], (dim,), jnp.float32),
        "rel_table": 0.02 * jax.random.normal(
            ks[6], ((2 * window_size - 1) ** 2, num_heads), jnp.float32),
        "ln2_w": 1.0 + 0.1 * jax.random.normal(ks[7], (dim,), jnp.float32),
        "ln2_b": 0.02 * jax.random.normal(ks[8], (dim,), jnp.float32),
        "w1": 0.02 * jax.random.normal(ks[9], (dim, hidden), jnp.float32),
        "b1": 0.02 * jax.random.normal(ks[10], (hidden,), jnp.float32),
        "w2": 0.02 * jax.random.normal(ks[11], (hidden, dim), jnp.float32),
        "b2": jnp.zeros((dim,), jnp.float32),
    }

    # three configs: shifted (no pad), non-shifted (1-block bias path),
    # and padded+shifted (token-mask path + partial MLP block)
    cases = [
        ("shifted",        2,  8,  8, 2),
        ("no_shift",       2,  8,  8, 0),
        ("padded_shifted", 3, 10, 10, 2),
    ]
    for i, (name, B, H, W, shift) in enumerate(cases):
        L = H * W
        x = jax.random.normal(jax.random.PRNGKey(100 + i), (B, L, dim), jnp.float32)
        out = swin_block_forward(x, params, H=H, W=W, window_size=window_size,
                                 shift_size=shift, num_heads=num_heads)
        out = jax.block_until_ready(out)
        ref = swin_block_ref(x, params, H=H, W=W, window_size=window_size,
                             shift_size=shift, num_heads=num_heads)
        # bf16 matmuls + approximate reciprocal -> loosened tolerance vs f32 ref
        np.testing.assert_allclose(np.asarray(out), np.asarray(ref),
                                   rtol=2e-2, atol=2e-2,
                                   err_msg="mismatch in case %s" % name)
    print("KERNEL_OK")
</pallas_src>

<mosaic_0001>
module attributes {stable_mosaic.version = 11 : i64} {
  func.func @_window_attn_kernel(%arg0: i32, %arg1: i32, %arg2: memref<1x16x32xf32, #tpu.memory_space<vmem>>, %arg3: memref<4x1x16x16xbf16, #tpu.memory_space<vmem>>, %arg4: memref<1x32xf32, #tpu.memory_space<vmem>>, %arg5: memref<1x32xf32, #tpu.memory_space<vmem>>, %arg6: memref<32x96xbf16, #tpu.memory_space<vmem>>, %arg7: memref<1x96xf32, #tpu.memory_space<vmem>>, %arg8: memref<32x32xbf16, #tpu.memory_space<vmem>>, %arg9: memref<1x32xf32, #tpu.memory_space<vmem>>, %arg10: memref<1x16x32xf32, #tpu.memory_space<vmem>>) attributes {dimension_semantics = [#tpu.dimension_semantics<parallel>, #tpu.dimension_semantics<parallel>], iteration_bounds = array<i64: 2, 4>, scalar_prefetch = 0 : i64, scratch_operands = 0 : i64, tpu.core_type = #tpu.core_type<tc>, window_params = [{transform_indices = @transform_0, window_bounds = array<i64: 1, 16, 32>}, {transform_indices = @transform_1, window_bounds = array<i64: 4, 1, 16, 16>}, {pipeline_mode = #tpu.pipeline_mode<synchronous>, transform_indices = @transform_2, window_bounds = array<i64: 1, 32>}, {pipeline_mode = #tpu.pipeline_mode<synchronous>, transform_indices = @transform_3, window_bounds = array<i64: 1, 32>}, {pipeline_mode = #tpu.pipeline_mode<synchronous>, transform_indices = @transform_4, window_bounds = array<i64: 32, 96>}, {pipeline_mode = #tpu.pipeline_mode<synchronous>, transform_indices = @transform_5, window_bounds = array<i64: 1, 96>}, {pipeline_mode = #tpu.pipeline_mode<synchronous>, transform_indices = @transform_6, window_bounds = array<i64: 32, 32>}, {pipeline_mode = #tpu.pipeline_mode<synchronous>, transform_indices = @transform_7, window_bounds = array<i64: 1, 32>}, {transform_indices = @transform_8, window_bounds = array<i64: 1, 16, 32>}]} {
    %c0 = arith.constant 0 : index
    %c0_0 = arith.constant 0 : index
    %c0_1 = arith.constant 0 : index
    %0 = vector.load %arg2[%c0, %c0_0, %c0_1] : memref<1x16x32xf32, #tpu.memory_space<vmem>>, vector<1x16x32xf32>
    %1 = vector.shape_cast %0 : vector<1x16x32xf32> to vector<16x32xf32>
    %cst = arith.constant dense<0.000000e+00> : vector<16xf32>
    %2 = vector.multi_reduction <add>, %1, %cst [1] : vector<16x32xf32> to vector<16xf32>
    %3 = vector.shape_cast %2 : vector<16xf32> to vector<16x1xf32>
    %cst_2 = arith.constant 3.200000e+01 : f32
    %4 = vector.broadcast %cst_2 : f32 to vector<16x1xf32>
    %5 = arith.divf %3, %4 : vector<16x1xf32>
    %6 = vector.broadcast %5 : vector<16x1xf32> to vector<16x32xf32>
    %7 = arith.subf %1, %6 : vector<16x32xf32>
    %8 = arith.mulf %7, %7 : vector<16x32xf32>
    %cst_3 = arith.constant dense<0.000000e+00> : vector<16xf32>
    %9 = vector.multi_reduction <add>, %8, %cst_3 [1] : vector<16x32xf32> to vector<16xf32>
    %10 = vector.shape_cast %9 : vector<16xf32> to vector<16x1xf32>
    %cst_4 = arith.constant 3.200000e+01 : f32
    %11 = vector.broadcast %cst_4 : f32 to vector<16x1xf32>
    %12 = arith.divf %10, %11 : vector<16x1xf32>
    %13 = vector.broadcast %5 : vector<16x1xf32> to vector<16x32xf32>
    %14 = arith.subf %1, %13 : vector<16x32xf32>
    %cst_5 = arith.constant 9.99999974E-6 : f32
    %15 = vector.broadcast %cst_5 : f32 to vector<16x1xf32>
    %16 = arith.addf %12, %15 : vector<16x1xf32>
    %17 = math.rsqrt %16 : vector<16x1xf32>
    %18 = vector.broadcast %17 : vector<16x1xf32> to vector<16x32xf32>
    %19 = arith.mulf %14, %18 : vector<16x32xf32>
    %c0_6 = arith.constant 0 : index
    %c0_7 = arith.constant 0 : index
    %20 = vector.load %arg4[%c0_6, %c0_7] : memref<1x32xf32, #tpu.memory_space<vmem>>, vector<1x32xf32>
    %21 = vector.broadcast %20 : vector<1x32xf32> to vector<16x32xf32>
    %22 = arith.mulf %19, %21 : vector<16x32xf32>
    %c0_8 = arith.constant 0 : index
    %c0_9 = arith.constant 0 : index
    %23 = vector.load %arg5[%c0_8, %c0_9] : memref<1x32xf32, #tpu.memory_space<vmem>>, vector<1x32xf32>
    %24 = vector.broadcast %23 : vector<1x32xf32> to vector<16x32xf32>
    %25 = arith.addf %22, %24 : vector<16x32xf32>
    %26 = arith.truncf %25 : vector<16x32xf32> to vector<16x32xbf16>
    %c0_10 = arith.constant 0 : index
    %c0_11 = arith.constant 0 : index
    %27 = vector.load %arg6[%c0_10, %c0_11] : memref<32x96xbf16, #tpu.memory_space<vmem>>, vector<32x96xbf16>
    %cst_12 = arith.constant dense<0.000000e+00> : vector<16x96xf32>
    %28 = tpu.matmul %26, %27, %cst_12 {dimension_numbers = #tpu.dot_dimension_numbers<[1], [0], [0], [1], [0, 0, 1, 1], [], []>} : vector<16x32xbf16>, vector<32x96xbf16>, vector<16x96xf32> -> vector<16x96xf32>
    %c0_13 = arith.constant 0 : index
    %c0_14 = arith.constant 0 : index
    %29 = vector.load %arg7[%c0_13, %c0_14] : memref<1x96xf32, #tpu.memory_space<vmem>>, vector<1x96xf32>
    %30 = vector.broadcast %29 : vector<1x96xf32> to vector<16x96xf32>
    %31 = arith.addf %28, %30 : vector<16x96xf32>
    %32 = vector.shape_cast %31 : vector<16x96xf32> to vector<1x16x96xf32>
    %c0_15 = arith.constant 0 : index
    %c0_16 = arith.constant 0 : index
    %c0_17 = arith.constant 0 : index
    %c0_18 = arith.constant 0 : index
    %33 = vector.load %arg3[%c0_15, %c0_16, %c0_17, %c0_18] : memref<4x1x16x16xbf16, #tpu.memory_space<vmem>>, vector<4x1x16x16xbf16>
    %34 = arith.extf %33 : vector<4x1x16x16xbf16> to vector<4x1x16x16xf32>
    %35 = vector.extract_strided_slice %32 {offsets = [0, 0, 0], sizes = [1, 16, 8], strides = [1, 1, 1]} : vector<1x16x96xf32> to vector<1x16x8xf32>
    %cst_19 = arith.constant 0.353553385 : f32
    %36 = vector.broadcast %cst_19 : f32 to vector<1x16x8xf32>
    %37 = arith.mulf %35, %36 : vector<1x16x8xf32>
    %38 = vector.extract_strided_slice %32 {offsets = [0, 0, 32], sizes = [1, 16, 8], strides = [1, 1, 1]} : vector<1x16x96xf32> to vector<1x16x8xf32>
    %39 = vector.extract_strided_slice %32 {offsets = [0, 0, 64], sizes = [1, 16, 8], strides = [1, 1, 1]} : vector<1x16x96xf32> to vector<1x16x8xf32>
    %40 = arith.truncf %37 : vector<1x16x8xf32> to vector<1x16x8xbf16>
    %41 = arith.truncf %38 : vector<1x16x8xf32> to vector<1x16x8xbf16>
    "tpu.trace_start"() <{level = 10 : i32, message = "wnd,wmd->wnm"}> : () -> ()
    %cst_20 = arith.constant dense<0.000000e+00> : vector<1x16x16xf32>
    %42 = tpu.matmul %40, %41, %cst_20 {dimension_numbers = #tpu.dot_dimension_numbers<[2], [2], [1], [1], [0, 0, 0, 1, 1, 1], [0], [0]>} : vector<1x16x8xbf16>, vector<1x16x8xbf16>, vector<1x16x16xf32> -> vector<1x16x16xf32>
    "tpu.trace_stop"() : () -> ()
    %43 = vector.extract_strided_slice %34 {offsets = [0, 0, 0, 0], sizes = [1, 1, 16, 16], strides = [1, 1, 1, 1]} : vector<4x1x16x16xf32> to vector<1x1x16x16xf32>
    %44 = vector.shape_cast %43 : vector<1x1x16x16xf32> to vector<1x16x16xf32>
    %45 = arith.addf %42, %44 : vector<1x16x16xf32>
    %cst_21 = arith.constant dense<0xFF800000> : vector<1x16xf32>
    %46 = vector.multi_reduction <maximumf>, %45, %cst_21 [2] : vector<1x16x16xf32> to vector<1x16xf32>
    %47 = vector.shape_cast %46 : vector<1x16xf32> to vector<1x16x1xf32>
    %48 = vector.broadcast %47 : vector<1x16x1xf32> to vector<1x16x16xf32>
    %49 = arith.subf %45, %48 : vector<1x16x16xf32>
    %50 = math.exp %49 : vector<1x16x16xf32>
    %cst_22 = arith.constant dense<0.000000e+00> : vector<1x16xf32>
    %51 = vector.multi_reduction <add>, %50, %cst_22 [2] : vector<1x16x16xf32> to vector<1x16xf32>
    %52 = vector.shape_cast %51 : vector<1x16xf32> to vector<1x16x1xf32>
    %53 = tpu.reciprocal %52 {approx = true} : vector<1x16x1xf32> -> vector<1x16x1xf32>
    %54 = vector.broadcast %53 : vector<1x16x1xf32> to vector<1x16x16xf32>
    %55 = arith.mulf %50, %54 : vector<1x16x16xf32>
    %56 = arith.truncf %55 : vector<1x16x16xf32> to vector<1x16x16xbf16>
    %57 = arith.truncf %39 : vector<1x16x8xf32> to vector<1x16x8xbf16>
    "tpu.trace_start"() <{level = 10 : i32, message = "wnm,wmd->wnd"}> : () -> ()
    %cst_23 = arith.constant dense<0.000000e+00> : vector<1x16x8xf32>
    %58 = tpu.matmul %56, %57, %cst_23 {dimension_numbers = #tpu.dot_dimension_numbers<[2], [1], [1], [2], [0, 0, 0, 1, 1, 2], [0], [0]>} : vector<1x16x16xbf16>, vector<1x16x8xbf16>, vector<1x16x8xf32> -> vector<1x16x8xf32>
    "tpu.trace_stop"() : () -> ()
    %59 = vector.extract_strided_slice %32 {offsets = [0, 0, 8], sizes = [1, 16, 8], strides = [1, 1, 1]} : vector<1x16x96xf32> to vector<1x16x8xf32>
    %cst_24 = arith.constant 0.353553385 : f32
    %60 = vector.broadcast %cst_24 : f32 to vector<1x16x8xf32>
    %61 = arith.mulf %59, %60 : vector<1x16x8xf32>
    %62 = vector.extract_strided_slice %32 {offsets = [0, 0, 40], sizes = [1, 16, 8], strides = [1, 1, 1]} : vector<1x16x96xf32> to vector<1x16x8xf32>
    %63 = vector.extract_strided_slice %32 {offsets = [0, 0, 72], sizes = [1, 16, 8], strides = [1, 1, 1]} : vector<1x16x96xf32> to vector<1x16x8xf32>
    %64 = arith.truncf %61 : vector<1x16x8xf32> to vector<1x16x8xbf16>
    %65 = arith.truncf %62 : vector<1x16x8xf32> to vector<1x16x8xbf16>
    "tpu.trace_start"() <{level = 10 : i32, message = "wnd,wmd->wnm"}> : () -> ()
    %cst_25 = arith.constant dense<0.000000e+00> : vector<1x16x16xf32>
    %66 = tpu.matmul %64, %65, %cst_25 {dimension_numbers = #tpu.dot_dimension_numbers<[2], [2], [1], [1], [0, 0, 0, 1, 1, 1], [0], [0]>} : vector<1x16x8xbf16>, vector<1x16x8xbf16>, vector<1x16x16xf32> -> vector<1x16x16xf32>
    "tpu.trace_stop"() : () -> ()
    %67 = vector.extract_strided_slice %34 {offsets = [1, 0, 0, 0], sizes = [1, 1, 16, 16], strides = [1, 1, 1, 1]} : vector<4x1x16x16xf32> to vector<1x1x16x16xf32>
    %68 = vector.shape_cast %67 : vector<1x1x16x16xf32> to vector<1x16x16xf32>
    %69 = arith.addf %66, %68 : vector<1x16x16xf32>
    %cst_26 = arith.constant dense<0xFF800000> : vector<1x16xf32>
    %70 = vector.multi_reduction <maximumf>, %69, %cst_26 [2] : vector<1x16x16xf32> to vector<1x16xf32>
    %71 = vector.shape_cast %70 : vector<1x16xf32> to vector<1x16x1xf32>
    %72 = vector.broadcast %71 : vector<1x16x1xf32> to vector<1x16x16xf32>
    %73 = arith.subf %69, %72 : vector<1x16x16xf32>
    %74 = math.exp %73 : vector<1x16x16xf32>
    %cst_27 = arith.constant dense<0.000000e+00> : vector<1x16xf32>
    %75 = vector.multi_reduction <add>, %74, %cst_27 [2] : vector<1x16x16xf32> to vector<1x16xf32>
    %76 = vector.shape_cast %75 : vector<1x16xf32> to vector<1x16x1xf32>
    %77 = tpu.reciprocal %76 {approx = true} : vector<1x16x1xf32> -> vector<1x16x1xf32>
    %78 = vector.broadcast %77 : vector<1x16x1xf32> to vector<1x16x16xf32>
    %79 = arith.mulf %74, %78 : vector<1x16x16xf32>
    %80 = arith.truncf %79 : vector<1x16x16xf32> to vector<1x16x16xbf16>
    %81 = arith.truncf %63 : vector<1x16x8xf32> to vector<1x16x8xbf16>
    "tpu.trace_start"() <{level = 10 : i32, message = "wnm,wmd->wnd"}> : () -> ()
    %cst_28 = arith.constant dense<0.000000e+00> : vector<1x16x8xf32>
    %82 = tpu.matmul %80, %81, %cst_28 {dimension_numbers = #tpu.dot_dimension_numbers<[2], [1], [1], [2], [0, 0, 0, 1, 1, 2], [0], [0]>} : vector<1x16x16xbf16>, vector<1x16x8xbf16>, vector<1x16x8xf32> -> vector<1x16x8xf32>
    "tpu.trace_stop"() : () -> ()
    %83 = vector.extract_strided_slice %32 {offsets = [0, 0, 16], sizes = [1, 16, 8], strides = [1, 1, 1]} : vector<1x16x96xf32> to vector<1x16x8xf32>
    %cst_29 = arith.constant 0.353553385 : f32
    %84 = vector.broadcast %cst_29 : f32 to vector<1x16x8xf32>
    %85 = arith.mulf %83, %84 : vector<1x16x8xf32>
    %86 = vector.extract_strided_slice %32 {offsets = [0, 0, 48], sizes = [1, 16, 8], strides = [1, 1, 1]} : vector<1x16x96xf32> to vector<1x16x8xf32>
    %87 = vector.extract_strided_slice %32 {offsets = [0, 0, 80], sizes = [1, 16, 8], strides = [1, 1, 1]} : vector<1x16x96xf32> to vector<1x16x8xf32>
    %88 = arith.truncf %85 : vector<1x16x8xf32> to vector<1x16x8xbf16>
    %89 = arith.truncf %86 : vector<1x16x8xf32> to vector<1x16x8xbf16>
    "tpu.trace_start"() <{level = 10 : i32, message = "wnd,wmd->wnm"}> : () -> ()
    %cst_30 = arith.constant dense<0.000000e+00> : vector<1x16x16xf32>
    %90 = tpu.matmul %88, %89, %cst_30 {dimension_numbers = #tpu.dot_dimension_numbers<[2], [2], [1], [1], [0, 0, 0, 1, 1, 1], [0], [0]>} : vector<1x16x8xbf16>, vector<1x16x8xbf16>, vector<1x16x16xf32> -> vector<1x16x16xf32>
    "tpu.trace_stop"() : () -> ()
    %91 = vector.extract_strided_slice %34 {offsets = [2, 0, 0, 0], sizes = [1, 1, 16, 16], strides = [1, 1, 1, 1]} : vector<4x1x16x16xf32> to vector<1x1x16x16xf32>
    %92 = vector.shape_cast %91 : vector<1x1x16x16xf32> to vector<1x16x16xf32>
    %93 = arith.addf %90, %92 : vector<1x16x16xf32>
    %cst_31 = arith.constant dense<0xFF800000> : vector<1x16xf32>
    %94 = vector.multi_reduction <maximumf>, %93, %cst_31 [2] : vector<1x16x16xf32> to vector<1x16xf32>
    %95 = vector.shape_cast %94 : vector<1x16xf32> to vector<1x16x1xf32>
    %96 = vector.broadcast %95 : vector<1x16x1xf32> to vector<1x16x16xf32>
    %97 = arith.subf %93, %96 : vector<1x16x16xf32>
    %98 = math.exp %97 : vector<1x16x16xf32>
    %cst_32 = arith.constant dense<0.000000e+00> : vector<1x16xf32>
    %99 = vector.multi_reduction <add>, %98, %cst_32 [2] : vector<1x16x16xf32> to vector<1x16xf32>
    %100 = vector.shape_cast %99 : vector<1x16xf32> to vector<1x16x1xf32>
    %101 = tpu.reciprocal %100 {approx = true} : vector<1x16x1xf32> -> vector<1x16x1xf32>
    %102 = vector.broadcast %101 : vector<1x16x1xf32> to vector<1x16x16xf32>
    %103 = arith.mulf %98, %102 : vector<1x16x16xf32>
    %104 = arith.truncf %103 : vector<1x16x16xf32> to vector<1x16x16xbf16>
    %105 = arith.truncf %87 : vector<1x16x8xf32> to vector<1x16x8xbf16>
    "tpu.trace_start"() <{level = 10 : i32, message = "wnm,wmd->wnd"}> : () -> ()
    %cst_33 = arith.constant dense<0.000000e+00> : vector<1x16x8xf32>
    %106 = tpu.matmul %104, %105, %cst_33 {dimension_numbers = #tpu.dot_dimension_numbers<[2], [1], [1], [2], [0, 0, 0, 1, 1, 2], [0], [0]>} : vector<1x16x16xbf16>, vector<1x16x8xbf16>, vector<1x16x8xf32> -> vector<1x16x8xf32>
    "tpu.trace_stop"() : () -> ()
    %107 = vector.extract_strided_slice %32 {offsets = [0, 0, 24], sizes = [1, 16, 8], strides = [1, 1, 1]} : vector<1x16x96xf32> to vector<1x16x8xf32>
    %cst_34 = arith.constant 0.353553385 : f32
    %108 = vector.broadcast %cst_34 : f32 to vector<1x16x8xf32>
    %109 = arith.mulf %107, %108 : vector<1x16x8xf32>
    %110 = vector.extract_strided_slice %32 {offsets = [0, 0, 56], sizes = [1, 16, 8], strides = [1, 1, 1]} : vector<1x16x96xf32> to vector<1x16x8xf32>
    %111 = vector.extract_strided_slice %32 {offsets = [0, 0, 88], sizes = [1, 16, 8], strides = [1, 1, 1]} : vector<1x16x96xf32> to vector<1x16x8xf32>
    %112 = arith.truncf %109 : vector<1x16x8xf32> to vector<1x16x8xbf16>
    %113 = arith.truncf %110 : vector<1x16x8xf32> to vector<1x16x8xbf16>
    "tpu.trace_start"() <{level = 10 : i32, message = "wnd,wmd->wnm"}> : () -> ()
    %cst_35 = arith.constant dense<0.000000e+00> : vector<1x16x16xf32>
    %114 = tpu.matmul %112, %113, %cst_35 {dimension_numbers = #tpu.dot_dimension_numbers<[2], [2], [1], [1], [0, 0, 0, 1, 1, 1], [0], [0]>} : vector<1x16x8xbf16>, vector<1x16x8xbf16>, vector<1x16x16xf32> -> vector<1x16x16xf32>
    "tpu.trace_stop"() : () -> ()
    %115 = vector.extract_strided_slice %34 {offsets = [3, 0, 0, 0], sizes = [1, 1, 16, 16], strides = [1, 1, 1, 1]} : vector<4x1x16x16xf32> to vector<1x1x16x16xf32>
    %116 = vector.shape_cast %115 : vector<1x1x16x16xf32> to vector<1x16x16xf32>
    %117 = arith.addf %114, %116 : vector<1x16x16xf32>
    %cst_36 = arith.constant dense<0xFF800000> : vector<1x16xf32>
    %118 = vector.multi_reduction <maximumf>, %117, %cst_36 [2] : vector<1x16x16xf32> to vector<1x16xf32>
    %119 = vector.shape_cast %118 : vector<1x16xf32> to vector<1x16x1xf32>
    %120 = vector.broadcast %119 : vector<1x16x1xf32> to vector<1x16x16xf32>
    %121 = arith.subf %117, %120 : vector<1x16x16xf32>
    %122 = math.exp %121 : vector<1x16x16xf32>
    %cst_37 = arith.constant dense<0.000000e+00> : vector<1x16xf32>
    %123 = vector.multi_reduction <add>, %122, %cst_37 [2] : vector<1x16x16xf32> to vector<1x16xf32>
    %124 = vector.shape_cast %123 : vector<1x16xf32> to vector<1x16x1xf32>
    %125 = tpu.reciprocal %124 {approx = true} : vector<1x16x1xf32> -> vector<1x16x1xf32>
    %126 = vector.broadcast %125 : vector<1x16x1xf32> to vector<1x16x16xf32>
    %127 = arith.mulf %122, %126 : vector<1x16x16xf32>
    %128 = arith.truncf %127 : vector<1x16x16xf32> to vector<1x16x16xbf16>
    %129 = arith.truncf %111 : vector<1x16x8xf32> to vector<1x16x8xbf16>
    "tpu.trace_start"() <{level = 10 : i32, message = "wnm,wmd->wnd"}> : () -> ()
    %cst_38 = arith.constant dense<0.000000e+00> : vector<1x16x8xf32>
    %130 = tpu.matmul %128, %129, %cst_38 {dimension_numbers = #tpu.dot_dimension_numbers<[2], [1], [1], [2], [0, 0, 0, 1, 1, 2], [0], [0]>} : vector<1x16x16xbf16>, vector<1x16x8xbf16>, vector<1x16x8xf32> -> vector<1x16x8xf32>
    "tpu.trace_stop"() : () -> ()
    %131 = tpu.concatenate %58, %82, %106, %130 in 2 : vector<1x16x8xf32>, vector<1x16x8xf32>, vector<1x16x8xf32>, vector<1x16x8xf32> -> vector<1x16x32xf32>
    %132 = vector.shape_cast %131 : vector<1x16x32xf32> to vector<16x32xf32>
    %133 = arith.truncf %132 : vector<16x32xf32> to vector<16x32xbf16>
    %c0_39 = arith.constant 0 : index
    %c0_40 = arith.constant 0 : index
    %134 = vector.load %arg8[%c0_39, %c0_40] : memref<32x32xbf16, #tpu.memory_space<vmem>>, vector<32x32xbf16>
    %cst_41 = arith.constant dense<0.000000e+00> : vector<16x32xf32>
    %135 = tpu.matmul %133, %134, %cst_41 {dimension_numbers = #tpu.dot_dimension_numbers<[1], [0], [0], [1], [0, 0, 1, 1], [], []>} : vector<16x32xbf16>, vector<32x32xbf16>, vector<16x32xf32> -> vector<16x32xf32>
    %c0_42 = arith.constant 0 : index
    %c0_43 = arith.constant 0 : index
    %136 = vector.load %arg9[%c0_42, %c0_43] : memref<1x32xf32, #tpu.memory_space<vmem>>, vector<1x32xf32>
    %137 = vector.broadcast %136 : vector<1x32xf32> to vector<16x32xf32>
    %138 = arith.addf %135, %137 : vector<16x32xf32>
    %c0_44 = arith.constant 0 : index
    %c0_45 = arith.constant 0 : index
    %c0_46 = arith.constant 0 : index
    %139 = vector.load %arg10[%c0_44, %c0_45, %c0_46] : memref<1x16x32xf32, #tpu.memory_space<vmem>>, vector<1x16x32xf32>
    %140 = vector.shape_cast %139 : vector<1x16x32xf32> to vector<16x32xf32>
    %141 = vector.shape_cast %138 : vector<16x32xf32> to vector<1x16x32xf32>
    tpu.vector_store %arg10[%c0_44, %c0_45, %c0_46], %141 {strides = array<i32>} : memref<1x16x32xf32, #tpu.memory_space<vmem>>, vector<1x16x32xf32>,
    return
  }
  func.func @transform_0(%arg0: i32, %arg1: i32) -> (i32, i32, i32) {
    %c0_i32 = arith.constant 0 : i32
    %c0_i32_0 = arith.constant 0 : i32
    return %arg0, %arg1, %c0_i32 : i32, i32, i32
  }
  func.func @transform_1(%arg0: i32, %arg1: i32) -> (i32, i32, i32, i32) {
    %c0_i32 = arith.constant 0 : i32
    %c0_i32_0 = arith.constant 0 : i32
    %c0_i32_1 = arith.constant 0 : i32
    %c0_i32_2 = arith.constant 0 : i32
    return %c0_i32, %arg1, %c0_i32_0, %c0_i32_1 : i32, i32, i32, i32
  }
  func.func @transform_2(%arg0: i32, %arg1: i32) -> (i32, i32) {
    %c0_i32 = arith.constant 0 : i32
    %c0_i32_0 = arith.constant 0 : i32
    %c0_i32_1 = arith.constant 0 : i32
    return %c0_i32, %c0_i32_0 : i32, i32
  }
  func.func @transform_3(%arg0: i32, %arg1: i32) -> (i32, i32) {
    %c0_i32 = arith.constant 0 : i32
    %c0_i32_0 = arith.constant 0 : i32
    %c0_i32_1 = arith.constant 0 : i32
    return %c0_i32, %c0_i32_0 : i32, i32
  }
  func.func @transform_4(%arg0: i32, %arg1: i32) -> (i32, i32) {
    %c0_i32 = arith.constant 0 : i32
    %c0_i32_0 = arith.constant 0 : i32
    %c0_i32_1 = arith.constant 0 : i32
    return %c0_i32, %c0_i32_0 : i32, i32
  }
  func.func @transform_5(%arg0: i32, %arg1: i32) -> (i32, i32) {
    %c0_i32 = arith.constant 0 : i32
    %c0_i32_0 = arith.constant 0 : i32
    %c0_i32_1 = arith.constant 0 : i32
    return %c0_i32, %c0_i32_0 : i32, i32
  }
  func.func @transform_6(%arg0: i32, %arg1: i32) -> (i32, i32) {
    %c0_i32 = arith.constant 0 : i32
    %c0_i32_0 = arith.constant 0 : i32
    %c0_i32_1 = arith.constant 0 : i32
    return %c0_i32, %c0_i32_0 : i32, i32
  }
  func.func @transform_7(%arg0: i32, %arg1: i32) -> (i32, i32) {
    %c0_i32 = arith.constant 0 : i32
    %c0_i32_0 = arith.constant 0 : i32
    %c0_i32_1 = arith.constant 0 : i32
    return %c0_i32, %c0_i32_0 : i32, i32
  }
  func.func @transform_8(%arg0: i32, %arg1: i32) -> (i32, i32, i32) {
    %c0_i32 = arith.constant 0 : i32
    %c0_i32_0 = arith.constant 0 : i32
    return %arg0, %arg1, %c0_i32 : i32, i32, i32
  }
}

</mosaic_0001>

<bundles_post_ra>
// kernel: tpu_custom_call.1
= control target key start
LH: loop header
LB: loop body
LE: loop exit
PB: predicated region body
PF: predicated region fallthrough
CT: control target
= control target key end

     0   :  { %s1356_s27 = smov 0   ;;  %s1358_s28 = smov 0   ;;  %s1543_s0 = inlined_call_operand.vmem [shape: f32[2,64,32], index: 0, kind: input, shape index: {}]   ;;  %s1544_s1 = inlined_call_operand.vmem [shape: bf16[4,4,16,16], index: 1, kind: input, shape index: {}]   ;;  %s1545_s2 = inlined_call_operand.vmem [shape: f32[1,32], index: 2, kind: input, shape index: {}]   ;;  %s1546_s3 = inlined_call_operand.vmem [shape: f32[1,32], index: 3, kind: input, shape index: {}]   ;;  %s1547_s4 = inlined_call_operand.vmem [shape: bf16[32,96], index: 4, kind: input, shape index: {}]   ;;  %s1548_s5 = inlined_call_operand.vmem [shape: f32[1,96], index: 5, kind: input, shape index: {}]   ;;  %s1549_s6 = inlined_call_operand.vmem [shape: bf16[32,32], index: 6, kind: input, shape index: {}]   ;;  %s1550_s7 = inlined_call_operand.vmem [shape: f32[1,32], index: 7, kind: input, shape index: {}]   ;;  %s1551_s8 = inlined_call_operand.vmem [shape: f32[2,64,32], index: 8, kind: output, shape index: {}]  }
   0x1   :  { %s1360_s29 = smov 0   ;;  %s1362_s30 = smov 0  }
   0x2   :  { %s1364_s9 = smov 0   ;;  %s1366_s10 = smov 0  }
   0x3   :  { %s1368_s11 = smov 0  }
   0x4 LB: > { %s27_s12 = sadd.s32 1, %s1286_s9  ;;  %s30_s13 = sadd.s32 1, %s1290_s10  ;;  %s1294_s11 = sphi %s1368_s11, %s18_s11   ;;  %s1290_s10 = sphi %s1366_s10, %s1557_s10   ;;  %s1286_s9 = sphi %s1364_s9, %s1556_s9   ;;  %s1282_s30 = sphi %s1362_s30, %s1555_s30   ;;  %s1278_s29 = sphi %s1360_s29, %s1554_s29   ;;  %s1274_s28 = sphi %s1358_s28, %s1553_s28   ;;  %s1270_s27 = sphi %s1356_s27, %s1552_s27  }
   0x5   : > { %p28_p0 = scmp.ge.s32.totalorder %s27_s12, 4  ;;  %s65_s14 = sadd.s32 1, %s1274_s28 }
   0x6   : > { %p72_p1 = scmp.ne.s32.totalorder %s1274_s28, %s1270_s27  ;;  %p73_p2 = scmp.eq.s32.totalorder %s1294_s11, 0 }
   0x7   : > { %s1559_s12 = smov (%p28_p0, %s27_s12), 0  ;;  %s1561_s13 = smov (!%p28_p0, %s30_s13), %s1290_s10 }
   0x8   : > { %s62_s15 = ssub.s32 %s1286_s9, %s1559_s12  ;;  %p74_p3 = por %p73_p2, %p72_p1 }
   0x9   : > { %p32_p4 = scmp.ge.s32.totalorder %s1561_s13, 2  ;;  %p63_p5 = scmp.eq.s32.totalorder %s62_s15, 0 }
   0xa   : > { %p1048_p6 = scmp.ge.s32.totalorder %s1294_s11, 8 }
   0xb   : > { %s1563_s13 = smov (%p32_p4, %s1561_s13), 0 }
   0xc   : > { %s1405_s16 = scalar_select %p63_p5, %s1274_s28, %s65_s14  }
   0xd   : > { %270 = sbr.rel (%p1048_p6) target bundleno = 26 (0x1a), region = 40 }
  0x12   : > { %286 = sbr.rel (!%p74_p3) target bundleno = 26 (0x1a), region = 48  ;;  %s288_s17 = sand.u32 (%p74_p3), 1, %s1274_s28  }
  0x13   : > { %s1088_s18 = sshll.u32 (%p74_p3), %s1286_s9, 3  ;;  %s1049_s19 = sshll.u32 (%p74_p3), %s288_s17, 5 }
  0x14   : > { %s293_s22 = scalar_lea.vmem (%p74_p3), %s1544_s1, %s1088_s18  ;;  %s290_s23 = scalar_lea.vmem (%p74_p3), [#allocation2], %s1049_s19 }
  0x15   : > { %v310_v0 = vld [vmem:[%s293_s22] sm:$0xff] (%p74_p3)  }
  0x16   : > { %v314_v1 = vld [vmem:[%s293_s22 + $0x20] sm:$0xff] (%p74_p3)   ;;  %311 = vst [vmem:[%s290_s23] sm:$0xff] (%p74_p3), %v310_v0  }
  0x17   : > { %v318_v2 = vld [vmem:[%s293_s22 + $0x40] sm:$0xff]   ;;  %315 = vst [vmem:[%s290_s23 + $0x8] sm:$0xff] %v314_v1  }
  0x18   : > { %v322_v3 = vld [vmem:[%s293_s22 + $0x60] sm:$0xff]   ;;  %319 = vst [vmem:[%s290_s23 + $0x10] sm:$0xff] %v318_v2  }
  0x19   : > { %323 = vst [vmem:[%s290_s23 + $0x18] sm:$0xff] %v322_v3  }
  0x1a PF: > { %p1052_p7 = scmp.ge.s32.totalorder %s1294_s11, 1  ;;  %p364_p8 = scmp.lt.s32.totalorder %s1294_s11, 9 }
  0x1c   : > { %p365_p9 = pnand %p1052_p7, %p364_p8 }
  0x1d   : > { %s1054_s24 = sshll.u32 (!%p365_p9), %s1278_s29, 1  ;;  %p418_p10 = scmp.lt.s32.totalorder (!%p365_p9), %s1282_s30, 1 }
  0x1e   : > { %368 = sbr.rel (%p365_p9) target bundleno = 1405 (0x57d), region = 89  ;;  %p420_p11 = scmp.lt.s32.totalorder (!%p365_p9), %s1054_s24, 7 }
  0x1f   : > { %s1297_s17 = smov (!%p365_p9), 72   ;;  %s1299_s29 = smov (!%p365_p9), 120  }
  0x20   : > { %s1301_s19 = smov (!%p365_p9), 104   ;;  %s1302_s20 = smov (!%p365_p9), 80  }
  0x21   : > { %s1303_s21 = smov (!%p365_p9), 112   ;;  %s371_s22 = sand.u32 (!%p365_p9), 1, %s1270_s27  }
  0x22   : > { %s1053_s23 = sshll.u32 (!%p365_p9), %s371_s22, 5  ;;  %s1304_s27 = smov (!%p365_p9), 64  }
  0x23   : > { %s1565_s30 = smov (!%p418_p10, %s1282_s30), 1  ;;  %s1567_s24 = smov (!%p420_p11, %s1054_s24), 7  ;;  %vm440_vm0 = vcmask 261120   ;;  %v1296_v8 = vmov 32.0   ;;  %v1090_v25 = vld [vmem:[%s1547_s4 + $0x8] sm:$0xff]  ;;  %v1089_v27 = vld [vmem:[%s1547_s4] sm:$0xff] }
  0x24   : > { %s1055_s25 = sshll.u32 %s1565_s30, 3  ;;  %1202 = vrcp.f32 %v1296_v8  ;;  %534 = vmatpush.bf16.msra.mxu0 %v1090_v25  ;;  %v1198_v46 = vld [vmem:[%s1545_s2] ss:$0 sm:$0xff]  ;;  %s1300_s30 = smov 88   ;;  %vm576_vm8 = vcmask 64512   ;;  %vm597_vm9 = vcmask 130048  }
  0x25   : > { %s1418_s26 = sadd.s32 %s1055_s25, %s1567_s24  ;;  %v1199_v51 = vld [vmem:[%s1546_s3] ss:$0 sm:$0xff]  ;;  %s373_s24 = scalar_lea.vmem [#allocation2], %s1053_s23  ;;  %vm894_vm10 = vcmask 195584  }
  0x26   : > { %s1056_s14 = sshll.u32 %s1418_s26, 3  ;;  %v1200_v56 = vld [vmem:[%s1548_s5] ss:$0 sm:$0xff]  ;;  %s1305_s25 = smov 56  }
  0x27   : > { %s425_s18 = scalar_lea.vmem %s1543_s0, %s1056_s14  ;;  %s1306_s15 = smov 40  }
  0x28   : > { %v438_v4 = vld [vmem:[%s425_s18] sm:$0xff]  ;;  %v439_v6 = vld [vmem:[%s425_s18 + $0x8] sm:$0xff]  ;;  %535 = vmatpush.bf16.msra.mxu0 %v1089_v27  ;;  %s1298_s18 = smov 96  }
  0x29   : > { %v441_v5 = vsel %vm440_vm0, %v438_v4, 0.0  ;;  %v444_v7 = vsel %vm440_vm0, %v439_v6, 0.0 }
  0x2a   : > { %442 = vadd.xlane.f32.xlu0 %v441_v5  ;;  %v1203_v9 = vpop.eup %1202 }
  0x2b   : > { %v448_v10 = vmul.f32 32.0, %v1203_v9  ;;  %vm452_vm1 = vweird.f32 %v1203_v9 }
  0x2d   : > { %v449_v11 = vsub.f32 1.0, %v448_v10 }
  0x2f   : > { %v450_v12 = vmul.f32 %v1203_v9, %v449_v11 }
  0x31   : > { %v451_v13 = vadd.f32 %v1203_v9, %v450_v12 }
  0x32   : > { %445 = vadd.xlane.f32.xlu0 %v444_v7 }
  0x33   : > { %v453_v14 = vsel %vm452_vm1, %v1203_v9, %v451_v13 }
  0x9d   : > { %v443_v15 = vpop.xlane.xlu0 %442 }
  0x9e   : > { %v454_v16 = vmul.f32 %v453_v14, %v443_v15 }
  0xa0   : > { %v456_v17 = vsub.f32 %v438_v4, %v454_v16 }
  0xa2   : > { %v458_v18 = vmul.f32 %v456_v17, %v456_v17 }
  0xa4   : > { %v460_v19 = vsel %vm440_vm0, %v458_v18, 0.0 }
  0xa5   : > { %461 = vadd.xlane.f32.xlu1 %v460_v19  ;;  %v446_v20 = vpop.xlane.xlu0 %445 }
  0xa6   : > { %v455_v21 = vmul.f32 %v453_v14, %v446_v20  ;;  %v1094_v20 = vld [vmem:[%s373_s24] sm:$0xff]  }
  0xa7   : > { %v1096_v25 = vunpack.c.h.bf16 %v1094_v20 }
  0xa8   : > { %v457_v22 = vsub.f32 %v439_v6, %v455_v21  ;;  %v1095_v21 = vunpack.c.l.bf16 %v1094_v20 }
  0xaa   : > { %v459_v23 = vmul.f32 %v457_v22, %v457_v22 }
  0xac   : > { %v463_v24 = vsel %vm440_vm0, %v459_v23, 0.0 }
  0xad   : > { %464 = vadd.xlane.f32.xlu1 %v463_v24 }
 0x118   : > { %v462_v26 = vpop.xlane.xlu1 %461 }
 0x119   : > { %v466_v28 = vmul.f32 %v462_v26, %v453_v14 }
 0x11b   : > { %v468_v29 = vadd.f32 1e-05, %v466_v28 }
 0x11d   : > { %1204 = vrsqrt.f32 %v468_v29  ;;  %vm476_vm3 = vweird.f32 %v468_v29 }
 0x120   : > { %v465_v30 = vpop.xlane.xlu1 %464 }
 0x121   : > { %v467_v31 = vmul.f32 %v465_v30, %v453_v14 }
 0x123   : > { %v1205_v32 = vpop.eup %1204  ;;  %v469_v33 = vadd.f32 1e-05, %v467_v31 }
 0x124   : > { %v471_v34 = vmul.f32 %v1205_v32, %v468_v29  ;;  %vm477_vm2 = vweird.f32 %v1205_v32  ;;  %v1109_v29 = vld [vmem:[%s373_s24 + $0x8] sm:$0xff]  }
 0x125   : > { %1206 = vrsqrt.f32 %v469_v33  ;;  %vm478_vm4 = vmor %vm476_vm3, %vm477_vm2  ;;  %vm486_vm6 = vweird.f32 %v469_v33  ;;  %v1099_v30 = vunpack.c.l.bf16 %v1109_v29 }
 0x126   : > { %v472_v35 = vmul.f32 %v1205_v32, %v471_v34 }
 0x128   : > { %v473_v36 = vmul.f32 0.5, %v472_v35  ;;  %v1110_v35 = vld [vmem:[%s373_s24 + $0x10] sm:$0xff]  }
 0x12a   : > { %v474_v37 = vsub.f32 1.5, %v473_v36  ;;  %v1100_v36 = vunpack.c.h.bf16 %v1109_v29 }
 0x12b   : > { %v1207_v38 = vpop.eup %1206 }
 0x12c   : > { %v475_v39 = vmul.f32 %v1205_v32, %v474_v37  ;;  %v481_v40 = vmul.f32 %v1207_v38, %v469_v33  ;;  %vm487_vm5 = vweird.f32 %v1207_v38  ;;  %v1104_v37 = vunpack.c.h.bf16 %v1110_v35 }
 0x12d   : > { %vm488_vm7 = vmor %vm486_vm6, %vm487_vm5 }
 0x12e   : > { %v482_v41 = vmul.f32 %v1207_v38, %v481_v40  ;;  %v479_v42 = vsel %vm478_vm4, %v1205_v32, %v475_v39 }
 0x12f   : > { %v490_v45 = vmul.f32 %v479_v42, %v456_v17  ;;  %v1111_v42 = vld [vmem:[%s373_s24 + $0x18] sm:$0xff]  }
 0x130   : > { %v483_v43 = vmul.f32 0.5, %v482_v41 }
 0x131   : > { %v496_v50 = vmul.f32 %v1198_v46, %v490_v45 }
 0x132   : > { %v484_v44 = vsub.f32 1.5, %v483_v43  ;;  %v1103_v43 = vunpack.c.l.bf16 %v1110_v35 }
 0x133   : > { %v502_v53 = vadd.f32 %v1199_v51, %v496_v50 }
 0x134   : > { %v485_v47 = vmul.f32 %v1207_v38, %v484_v44 }
 0x136   : > { %v489_v48 = vsel %vm488_vm7, %v1207_v38, %v485_v47 }
 0x137   : > { %v491_v49 = vmul.f32 %v489_v48, %v457_v22 }
 0x139   : > { %v497_v52 = vmul.f32 %v1198_v46, %v491_v49  ;;  %v1107_v46 = vunpack.c.l.bf16 %v1111_v42 }
 0x13b   : > { %v503_v54 = vadd.f32 %v1199_v51, %v497_v52  ;;  %v1108_v52 = vunpack.c.h.bf16 %v1111_v42 }
 0x13d   : > { %v504_v55 = vpack.c.bf16 %v503_v54, %v502_v53 }
 0x13f   : > { %1068 = vmatmul.msk.bf16.vlgmr.msra.gmra.mxu0 %vm440_vm0, %v504_v55 }
 0x1bc   : > { %v537_v57 = vpop.f32.mrf.mxu0 }
 0x1bd   : > { %v538_v58 = vadd.f32 %v1200_v56, %v537_v57 }
 0x1bf   : > { %v558_v59 = vmul.f32 0.35355338, %v538_v58  ;;  %v562_v61 = vpack.c.bf16 %v538_v58, %v538_v58 }
 0x1c1   : > { %v560_v63 = vpack.c.bf16 %v558_v59, %v558_v59  ;;  %v571_v2 = vunpack.c.l.b16 %v562_v61 }
 0x1c3   : > { %v566_v5 = vunpack.c.l.b16 %v560_v63 }
 0x1c4   : > { %v539_v60 = vpop.f32.mrf.mxu0 }
 0x1c5   : > { %v540_v62 = vadd.f32 %v1200_v56, %v539_v60 }
 0x1c7   : > { %v559_v0 = vmul.f32 0.35355338, %v540_v62  ;;  %v563_v1 = vpack.c.bf16 %v540_v62, %v540_v62 }
 0x1c9   : > { %v561_v3 = vpack.c.bf16 %v559_v0, %v559_v0  ;;  %v572_v4 = vunpack.c.l.b16 %v563_v1 }
 0x1cb   : > { %v567_v6 = vunpack.c.l.b16 %v561_v3  ;;  %v1446_v7 = vpack.c.b16 %v572_v4, %v571_v2 }
 0x1cd   : > { %v568_v8 = vpack.c.b16 %v567_v6, %v566_v5  ;;  %795 = vrot.lane.b32.xlu1 %v1446_v7, %s1297_s17  ;;  %574 = vrot.lane.b32.xlu2 %v1446_v7, %s1298_s18  ;;  %s1307_s17 = smov 48   ;;  %s1308_s18 = smov 8  }
 0x1cf   : > { %647 = vrot.lane.b32.xlu0 %v568_v8, %s1299_s29  ;;  %s1309_s29 = smov 24  }
 0x1d5   : > { %649 = vrot.lane.b32.xlu2 %v1446_v7, %s1300_s30  ;;  %s1310_s30 = smov 16  }
 0x1dd   : > { %793 = vrot.lane.b32.xlu2 %v568_v8, %s1301_s19 }
 0x1e5   : > { %722 = vrot.lane.b32.xlu2 %v1446_v7, %s1302_s20 }
 0x1ed   : > { %720 = vrot.lane.b32.xlu2 %v568_v8, %s1303_s21 }
 0x227   : > { %v575_v9 = vpop.permute.xlu2 %574 }
 0x228   : > { %v581_v10 = vsel %vm576_vm8, %v575_v9, 0 }
 0x229   : > { %590 = vmatpush.bf16.xpose.msra.mxu1 %v581_v10 }
 0x22f   : > { %v650_v11 = vpop.permute.xlu2 %649 }
 0x230   : > { %1069 = vmatmul.msk.bf16.vlgmr.msra.gmra.mxu1 %vm576_vm8, %v568_v8  ;;  %v655_v12 = vsel %vm576_vm8, %v650_v11, 0 }
 0x231   : > { %664 = vmatpush.bf16.xpose.msra.mxu3 %v655_v12 }
 0x237   : > { %v794_v13 = vpop.permute.xlu2 %793 }
 0x23f   : > { %v796_v14 = vpop.permute.xlu1 %795  ;;  %v723_v15 = vpop.permute.xlu2 %722 }
 0x240   : > { %v728_v16 = vsel %vm576_vm8, %v723_v15, 0  ;;  %v801_v17 = vsel %vm576_vm8, %v796_v14, 0 }
 0x241   : > { %737 = vmatpush.bf16.xpose.msrb.mxu0 %v728_v16  ;;  %810 = vmatpush.bf16.xpose.msrb.mxu3 %v801_v17  ;;  %v648_v18 = vpop.permute.xlu0 %647 }
 0x242   : > { %1071 = vmatmul.msk.bf16.vlgmr.msra.gmra.mxu3 %vm576_vm8, %v648_v18 }
 0x247   : > { %v721_v19 = vpop.permute.xlu2 %720 }
 0x248   : > { %1073 = vmatmul.msk.bf16.vlgmr.msrb.gmra.mxu0 %vm576_vm8, %v721_v19 }
 0x252   : > { %1075 = vmatmul.msk.bf16.vlgmr.msrb.gmra.mxu3 %vm576_vm8, %v794_v13 }
 0x2ad   : > { %v592_v22 = vpop.f32.mrf.mxu1 }
 0x2ae   : > { %v593_v23 = vadd.f32 %v1095_v21, %v592_v22 }
 0x2b0   : > { %v598_v24 = vsel %vm597_vm9, %v593_v23, -inf }
 0x2b1   : > { %599 = vmax.xlane.f32.xlu0 %v598_v24 }
 0x2b5   : > { %v594_v26 = vpop.f32.mrf.mxu1 }
 0x2b6   : > { %v595_v27 = vadd.f32 %v1096_v25, %v594_v26 }
 0x2b8   : > { %v601_v28 = vsel %vm597_vm9, %v595_v27, -inf }
 0x2b9   : > { %602 = vmax.xlane.f32.xlu2 %v601_v28 }
 0x2c5   : > { %v666_v31 = vpop.f32.mrf.mxu3  ;;  %v739_v32 = vpop.f32.mrf.mxu0 }
 0x2c6   : > { %v667_v33 = vadd.f32 %v1099_v30, %v666_v31  ;;  %v740_v47 = vadd.f32 %v1103_v43, %v739_v32 }
 0x2c8   : > { %v671_v34 = vsel %vm597_vm9, %v667_v33, -inf  ;;  %v744_v51 = vsel %vm597_vm9, %v740_v47, -inf }
 0x2c9   : > { %672 = vmax.xlane.f32.xlu1 %v671_v34 }
 0x2cd   : > { %v668_v38 = vpop.f32.mrf.mxu3  ;;  %v741_v39 = vpop.f32.mrf.mxu0 }
 0x2ce   : > { %v669_v40 = vadd.f32 %v1100_v36, %v668_v38  ;;  %v742_v41 = vadd.f32 %v1104_v37, %v741_v39 }
 0x2d0   : > { %v747_v44 = vsel %vm597_vm9, %v742_v41, -inf  ;;  %v674_v45 = vsel %vm597_vm9, %v669_v40, -inf }
 0x2d1   : > { %748 = vmax.xlane.f32.xlu2 %v747_v44  ;;  %675 = vmax.xlane.f32.xlu0 %v674_v45 }
 0x2d5   : > { %v812_v48 = vpop.f32.mrf.mxu3 }
 0x2d6   : > { %v813_v49 = vadd.f32 %v1107_v46, %v812_v48 }
 0x2d8   : > { %v817_v50 = vsel %vm597_vm9, %v813_v49, -inf }
 0x2d9   : > { %818 = vmax.xlane.f32.xlu2 %v817_v50  ;;  %745 = vmax.xlane.f32.xlu0 %v744_v51 }
 0x2dd   : > { %v814_v53 = vpop.f32.mrf.mxu3 }
 0x2de   : > { %v815_v54 = vadd.f32 %v1108_v52, %v814_v53 }
 0x2e0   : > { %v820_v55 = vsel %vm597_vm9, %v815_v54, -inf }
 0x2e1   : > { %821 = vmax.xlane.f32.xlu1 %v820_v55 }
 0x2f1   : > { %627 = vrot.lane.b32.xlu2 %v1446_v7, %s1304_s27 }
 0x2fa   : > { %700 = vrot.lane.b32.xlu1 %v1446_v7, %s1305_s25 }
 0x324   : > { %v600_v56 = vpop.xlane.xlu0 %599 }
 0x325   : > { %v604_v57 = vsub.f32 %v593_v23, %v600_v56 }
 0x327   : > { %v606_v58 = vmul.f32 1.442695, %v604_v57 }
 0x329   : > { %1208 = vpow2.f32 %v606_v58 }
 0x32c   : > { %v603_v59 = vpop.xlane.xlu2 %602 }
 0x32d   : > { %v605_v60 = vsub.f32 %v595_v27, %v603_v59 }
 0x32f   : > { %v1471_v61 = vpop.eup %1208  ;;  %v608_v62 = vmul.f32 1.442695, %v605_v60 }
 0x330   : > { %v610_v63 = vsel %vm597_vm9, %v1471_v61, 0.0 }
 0x331   : > { %1210 = vpow2.f32 %v608_v62  ;;  %611 = vadd.xlane.f32.xlu1 %v610_v63 }
 0x337   : > { %v1211_v0 = vpop.eup %1210 }
 0x338   : > { %v613_v1 = vsel %vm597_vm9, %v1211_v0, 0.0 }
 0x339   : > { %614 = vadd.xlane.f32.xlu0 %v613_v1 }
 0x33c   : > { %v673_v2 = vpop.xlane.xlu1 %672 }
 0x33d   : > { %v677_v3 = vsub.f32 %v667_v33, %v673_v2 }
 0x33f   : > { %v679_v4 = vmul.f32 1.442695, %v677_v3 }
 0x341   : > { %1212 = vpow2.f32 %v679_v4 }
 0x344   : > { %v749_v5 = vpop.xlane.xlu2 %748  ;;  %v676_v6 = vpop.xlane.xlu0 %675 }
 0x345   : > { %v751_v8 = vsub.f32 %v742_v41, %v749_v5  ;;  %v678_v11 = vsub.f32 %v669_v40, %v676_v6 }
 0x347   : > { %v1476_v9 = vpop.eup %1212  ;;  %v754_v10 = vmul.f32 1.442695, %v751_v8  ;;  %v681_v13 = vmul.f32 1.442695, %v678_v11 }
 0x348   : > { %v683_v12 = vsel %vm597_vm9, %v1476_v9, 0.0 }
 0x349   : > { %1214 = vpow2.f32 %v754_v10  ;;  %684 = vadd.xlane.f32.xlu1 %v683_v12 }
 0x34a   : > { %1216 = vpow2.f32 %v681_v13 }
 0x34c   : > { %v819_v14 = vpop.xlane.xlu2 %818  ;;  %v746_v15 = vpop.xlane.xlu0 %745 }
 0x34d   : > { %v750_v16 = vsub.f32 %v740_v47, %v746_v15  ;;  %v823_v18 = vsub.f32 %v813_v49, %v819_v14 }
 0x34f   : > { %v1480_v17 = vpop.eup %1214  ;;  %v752_v19 = vmul.f32 1.442695, %v750_v16  ;;  %v825_v21 = vmul.f32 1.442695, %v823_v18 }
 0x350   : > { %v759_v20 = vsel %vm597_vm9, %v1480_v17, 0.0  ;;  %v1217_v24 = vpop.eup %1216 }
 0x351   : > { %760 = vadd.xlane.f32.xlu0 %v759_v20  ;;  %1218 = vpow2.f32 %v752_v19  ;;  %v686_v27 = vsel %vm597_vm9, %v1217_v24, 0.0 }
 0x352   : > { %1220 = vpow2.f32 %v825_v21 }
 0x354   : > { %v822_v22 = vpop.xlane.xlu1 %821  ;;  %v628_v23 = vpop.permute.xlu2 %627 }
 0x355   : > { %640 = vmatpush.bf16.msra.mxu2 %v628_v23  ;;  %v824_v25 = vsub.f32 %v815_v54, %v822_v22 }
 0x357   : > { %v1484_v26 = vpop.eup %1218  ;;  %v827_v29 = vmul.f32 1.442695, %v824_v25 }
 0x358   : > { %v756_v28 = vsel %vm597_vm9, %v1484_v26, 0.0  ;;  %v1221_v30 = vpop.eup %1220 }
 0x359   : > { %687 = vadd.xlane.f32.xlu0 %v686_v27  ;;  %757 = vadd.xlane.f32.xlu2 %v756_v28  ;;  %1222 = vpow2.f32 %v827_v29  ;;  %v829_v31 = vsel %vm597_vm9, %v1221_v30, 0.0  ;;  %v1092_v28 = vld [vmem:[%s1549_s6 + $0x8] sm:$0xff]  ;;  %v1091_v29 = vld [vmem:[%s1549_s6] sm:$0xff] }
 0x35a   : > { %927 = vmatpush.bf16.msra.mxu0 %v1092_v28 }
 0x35e   : > { %928 = vmatpush.bf16.msra.mxu0 %v1091_v29 }
 0x35f   : > { %v1223_v32 = vpop.eup %1222 }
 0x360   : > { %v832_v33 = vsel %vm597_vm9, %v1223_v32, 0.0 }
 0x361   : > { %830 = vadd.xlane.f32.xlu0 %v829_v31 }
 0x362   : > { %846 = vrot.lane.b32.xlu1 %v1446_v7, %s1306_s15  ;;  %s435_s15 = scalar_lea.vmem %s1551_s8, %s1056_s14 }
 0x369   : > { %833 = vadd.xlane.f32.xlu0 %v832_v33 }
 0x36c   : > { %v701_v34 = vpop.permute.xlu1 %700 }
 0x36d   : > { %713 = vmatpush.bf16.msrb.mxu2 %v701_v34 }
 0x37d   : > { %773 = vrot.lane.b32.xlu0 %v1446_v7, %s1307_s17 }
 0x3a4   : > { %v612_v35 = vpop.xlane.xlu1 %611 }
 0x3a5   : > { %1224 = vrcp.f32 %v612_v35 }
 0x3ab   : > { %v1225_v37 = vpop.eup %1224 }
 0x3ac   : > { %v615_v36 = vpop.xlane.xlu0 %614  ;;  %v618_v38 = vmul.f32 %v1225_v37, %v1471_v61 }
 0x3ad   : > { %1226 = vrcp.f32 %v615_v36 }
 0x3ae   : > { %v620_v41 = vpack.c.bf16 %v618_v38, %v618_v38 }
 0x3b0   : > { %v624_v43 = vunpack.c.l.b16 %v620_v41 }
 0x3b3   : > { %v1227_v39 = vpop.eup %1226 }
 0x3b4   : > { %v619_v40 = vmul.f32 %v1227_v39, %v1211_v0 }
 0x3b6   : > { %v621_v42 = vpack.c.bf16 %v619_v40, %v619_v40 }
 0x3b8   : > { %v625_v44 = vunpack.c.l.b16 %v621_v42 }
 0x3ba   : > { %v626_v45 = vpack.c.b16 %v625_v44, %v624_v43 }
 0x3bc   : > { %1070 = vmatmul.msk.bf16.vlgmr.msra.gmra.mxu2 %vm597_vm9, %v626_v45  ;;  %v685_v46 = vpop.xlane.xlu1 %684 }
 0x3bd   : > { %1228 = vrcp.f32 %v685_v46  ;;  %v1201_v46 = vld [vmem:[%s1550_s7] ss:$0 sm:$0xff] }
 0x3c3   : > { %v1229_v48 = vpop.eup %1228 }
 0x3c4   : > { %v761_v47 = vpop.xlane.xlu0 %760  ;;  %v691_v49 = vmul.f32 %v1229_v48, %v1476_v9 }
 0x3c6   : > { %v693_v51 = vpack.c.bf16 %v691_v49, %v691_v49 }
 0x3c8   : > { %v697_v56 = vunpack.c.l.b16 %v693_v51 }
 0x3cc   : > { %v688_v7 = vpop.xlane.xlu0 %687  ;;  %v758_v58 = vpop.xlane.xlu2 %757 }
 0x3cd   : > { %1230 = vrcp.f32 %v688_v7 }
 0x3d3   : > { %v1231_v50 = vpop.eup %1230 }
 0x3d4   : > { %v692_v52 = vmul.f32 %v1231_v50, %v1217_v24  ;;  %v847_v53 = vpop.permute.xlu1 %846  ;;  %v831_v54 = vpop.xlane.xlu0 %830 }
 0x3d5   : > { %859 = vmatpush.bf16.msra.mxu2 %v847_v53  ;;  %1232 = vrcp.f32 %v831_v54 }
 0x3d6   : > { %v694_v55 = vpack.c.bf16 %v692_v52, %v692_v52  ;;  %1234 = vrcp.f32 %v758_v58 }
 0x3d8   : > { %v698_v57 = vunpack.c.l.b16 %v694_v55 }
 0x3da   : > { %v699_v59 = vpack.c.b16 %v698_v57, %v697_v56 }
 0x3db   : > { %v1233_v61 = vpop.eup %1232 }
 0x3dc   : > { %1072 = vmatmul.msk.bf16.vlgmr.msrb.gmra.mxu2 %vm597_vm9, %v699_v59  ;;  %v834_v60 = vpop.xlane.xlu0 %833  ;;  %v837_v62 = vmul.f32 %v1233_v61, %v1221_v30  ;;  %v1235_v63 = vpop.eup %1234 }
 0x3dd   : > { %1236 = vrcp.f32 %v834_v60  ;;  %v764_v4 = vmul.f32 %v1235_v63, %v1484_v26 }
 0x3de   : > { %1238 = vrcp.f32 %v761_v47  ;;  %v839_v2 = vpack.c.bf16 %v837_v62, %v837_v62 }
 0x3df   : > { %v766_v10 = vpack.c.bf16 %v764_v4, %v764_v4 }
 0x3e0   : > { %v843_v8 = vunpack.c.l.b16 %v839_v2 }
 0x3e1   : > { %v770_v13 = vunpack.c.l.b16 %v766_v10 }
 0x3e3   : > { %v1237_v0 = vpop.eup %1236 }
 0x3e4   : > { %v1239_v1 = vpop.eup %1238  ;;  %v838_v3 = vmul.f32 %v1237_v0, %v1223_v32 }
 0x3e5   : > { %v765_v6 = vmul.f32 %v1239_v1, %v1480_v17 }
 0x3e6   : > { %v840_v5 = vpack.c.bf16 %v838_v3, %v838_v3 }
 0x3e7   : > { %v767_v12 = vpack.c.bf16 %v765_v6, %v765_v6 }
 0x3e8   : > { %v844_v9 = vunpack.c.l.b16 %v840_v5 }
 0x3e9   : > { %v771_v14 = vunpack.c.l.b16 %v767_v12 }
 0x3ea   : > { %v845_v11 = vpack.c.b16 %v844_v9, %v843_v8 }
 0x3eb   : > { %v772_v16 = vpack.c.b16 %v771_v14, %v770_v13 }
 0x3ec   : > { %1076 = vmatmul.msk.bf16.vlgmr.msra.gmra.mxu2 %vm597_vm9, %v845_v11 }
 0x3ef   : > { %v774_v15 = vpop.permute.xlu0 %773 }
 0x3f0   : > { %786 = vmatpush.bf16.msrb.mxu1 %v774_v15 }
 0x3f3   : > { %1074 = vmatmul.msk.bf16.vlgmr.msrb.gmra.mxu1 %vm597_vm9, %v772_v16 }
 0x43f   : > { %v642_v18 = vpop.f32.mrf.mxu2 }
 0x447   : > { %v644_v19 = vpop.f32.mrf.mxu2 }
 0x45f   : > { %v715_v20 = vpop.f32.mrf.mxu2 }
 0x467   : > { %v717_v21 = vpop.f32.mrf.mxu2 }
 0x468   : > { %v1183_v22 = vpack.i.bf16 %v717_v21, %v715_v20 }
 0x46a   : > { %1184 = vrot.lane.b32.xlu1 %v1183_v22, %s1308_s18 }
 0x46f   : > { %v861_v17 = vpop.f32.mrf.mxu2 }
 0x470   : > { %v788_v23 = vpop.f32.mrf.mxu1 }
 0x477   : > { %v863_v24 = vpop.f32.mrf.mxu2 }
 0x478   : > { %v1193_v25 = vpack.i.bf16 %v863_v24, %v861_v17  ;;  %v790_v26 = vpop.f32.mrf.mxu1 }
 0x479   : > { %v1188_v27 = vpack.i.bf16 %v790_v26, %v788_v23 }
 0x47a   : > { %1194 = vrot.lane.b32.xlu0 %v1193_v25, %s1309_s29 }
 0x47b   : > { %1189 = vrot.lane.b32.xlu1 %v1188_v27, %s1310_s30 }
 0x4dc   : > { %v1185_v30 = vpop.permute.xlu1 %1184 }
 0x4dd   : > { %v1187_v31 = vunpack.i.h.bf16 %v1185_v30  ;;  %v1186_v32 = vunpack.i.l.bf16 %v1185_v30 }
 0x4df   : > { %v891_v37 = vsel %vm576_vm8, %v644_v19, %v1187_v31  ;;  %v890_v38 = vsel %vm576_vm8, %v642_v18, %v1186_v32 }
 0x4ec   : > { %v1195_v33 = vpop.permute.xlu0 %1194 }
 0x4ed   : > { %v1190_v34 = vpop.permute.xlu1 %1189  ;;  %v1197_v39 = vunpack.i.h.bf16 %v1195_v33  ;;  %v1196_v40 = vunpack.i.l.bf16 %v1195_v33 }
 0x4ee   : > { %v1192_v35 = vunpack.i.h.bf16 %v1190_v34  ;;  %v1191_v36 = vunpack.i.l.bf16 %v1190_v34 }
 0x4f0   : > { %v893_v41 = vsel %vm597_vm9, %v891_v37, %v1192_v35  ;;  %v892_v42 = vsel %vm597_vm9, %v890_v38, %v1191_v36 }
 0x4f1   : > { %v895_v43 = vsel %vm894_vm10, %v892_v42, %v1196_v40  ;;  %v896_v44 = vsel %vm894_vm10, %v893_v41, %v1197_v39 }
 0x4f2   : > { %v897_v45 = vpack.c.bf16 %v896_v44, %v895_v43 }
 0x4f4   : > { %1085 = vmatmul.msk.bf16.vlgmr.msra.gmra.mxu0 %vm440_vm0, %v897_v45 }
 0x571   : > { %v930_v47 = vpop.f32.mrf.mxu0 }
 0x572   : > { %v931_v7 = vadd.f32 %v1201_v46, %v930_v47 }
 0x574   : > { %935 = vst.msk [vmem:[%s435_s15] sm:$0xff] %vm440_vm0, %v931_v7 }
 0x579   : > { %v932_v48 = vpop.f32.mrf.mxu0 }
 0x57a   : > { %v933_v49 = vadd.f32 %v1201_v46, %v932_v48 }
 0x57c   : > { %936 = vst.msk [vmem:[%s435_s15 + $0x8] sm:$0xff] %vm440_vm0, %v933_v49 }
 0x57d PF: > { %s18_s11 = sadd.s32 1, %s1294_s11   ;;  %s1552_s27 = smov %s1274_s28 }
 0x57e   : > { %p15_p12 = scmp.ge.s32.totalorder %s18_s11, 10   ;;  %s1553_s28 = smov %s1405_s16 }
 0x57f   : > { %s1554_s29 = smov %s1286_s9  ;;  %s1555_s30 = smov %s1290_s10 }
 0x580   : > { %s1556_s9 = smov %s1559_s12  ;;  %s1557_s10 = smov %s1563_s13 }
 0x581   :  { %17 = sbr.rel (!%p15_p12) target bundleno = 4 (0x4), region = 131 }

</bundles_post_ra>
